<compile_context>
chip_gen: v7x
topology: tpu7x:2x2x1
jax: 0.10.0
libtpu: 0.0.40
codegen_flags: <defaults>
</compile_context>

<pallas_src>
import functools

import jax
import jax.numpy as jnp
from jax.experimental import pallas as pl
from jax.experimental.pallas import tpu as pltpu

EXPANSION = 4
_LANE = 128


# ------------------------------- helpers ----------------------------------- #

def _round_up(x, m):
    return ((x + m - 1) // m) * m


@functools.lru_cache(maxsize=None)
def _vmem_limit_bytes():
    """Generation-aware VMEM limit: ~3/4 of physical, capped at 100 MiB.
    v7x (64 MiB/TC) -> 48 MiB; v5e/v6e (128 MiB) -> 96 MiB."""
    cap = 128 * 1024 * 1024
    try:
        cap = int(getattr(pltpu.get_tpu_info(), "vmem_capacity_bytes", cap))
    except Exception:
        pass
    return int(min((cap * 3) // 4, 100 * 1024 * 1024))


def _mosaic_params(dimension_semantics):
    return pltpu.CompilerParams(dimension_semantics=dimension_semantics,
                                vmem_limit_bytes=_vmem_limit_bytes())


_TILE_CANDIDATES = (2048, 1792, 1536, 1280, 1024, 896, 768, 640, 512, 448, 384,
                    320, 256, 224, 192, 160, 128, 112, 96, 80, 64, 56, 48, 40,
                    32, 24, 16, 8)


def _pick_row_tile(m):
    """Largest row tile (<= generation-aware cap) dividing m exactly with a
    grid of >= 2 steps; falls back to whole m."""
    cap = 2048 if _vmem_limit_bytes() >= 80 * 1024 * 1024 else 768
    for t in _TILE_CANDIDATES:
        if t <= cap and t <= m and m % t == 0 and m // t >= 2:
            return t
    return m


def _pick_out_row_block(ho, cap=32):
    """Largest divisor of ho (<= cap) giving >= 2 row blocks (pipelining /
    megacore); falls back to the whole image."""
    for t in range(min(cap, ho // 2), 0, -1):
        if ho % t == 0:
            return t
    return ho


# ----------------------------- Pallas kernels ------------------------------ #

def _mm_bias_relu_kernel(x_ref, w_ref, b_ref, o_ref):
    # y = relu( x @ w + bias )   (BN scale pre-folded into w)
    y = jnp.dot(x_ref[...], w_ref[...], preferred_element_type=jnp.float32)
    o_ref[...] = jnp.maximum(y + b_ref[...], 0.0).astype(o_ref.dtype)


def _mm_bias_add_relu_kernel(x_ref, w_ref, b_ref, r_ref, o_ref):
    # y = relu( x @ w + bias + residual )   (identity shortcut, bf16 residual)
    y = jnp.dot(x_ref[...], w_ref[...], preferred_element_type=jnp.float32)
    y = y + b_ref[...] + r_ref[...].astype(jnp.float32)
    o_ref[...] = jnp.maximum(y, 0.0).astype(o_ref.dtype)


def _mm_bias_ds_add_relu_kernel(x_ref, w_ref, b_ref, xs_ref, wd_ref, o_ref):
    # y = relu( x @ w + bias + xs @ wd )   (downsample shortcut fused in-kernel)
    y = jnp.dot(x_ref[...], w_ref[...], preferred_element_type=jnp.float32)
    y = y + b_ref[...]
    y = y + jnp.dot(xs_ref[...], wd_ref[...], preferred_element_type=jnp.float32)
    o_ref[...] = jnp.maximum(y, 0.0).astype(o_ref.dtype)


def _conv3x3_bias_relu_kernel(x_ref, w_ref, b_ref, o_ref, pad_ref, *, stride):
    # x_ref  : (1, H, W, C) bf16  -- full image, revisited across row blocks
    # w_ref  : (9, C, Cout) bf16  -- BN scale folded in; tap index = 3*dy + dx
    # b_ref  : (1, Cout) f32
    # o_ref  : (1, THo, Wo, Cout) bf16 -- one block of (strided) output rows
    # pad_ref: (H+2, W+2, C) bf16 scratch, 1-pixel zero halo; filled once per
    #          batch image (rb == 0) and reused across the row-block axis.
    _, H, W, C = x_ref.shape
    _, tho, wo, cout = o_ref.shape
    rb = pl.program_id(1)

    @pl.when(rb == 0)
    def _fill_halo():
        pad_ref[...] = jnp.zeros_like(pad_ref)
        pad_ref[1:H + 1, 1:W + 1, :] = x_ref[0]

    row0 = pl.multiple_of(rb * (stride * tho), stride * tho)

    # Per-tap accumulating matmuls (no im2col concat); f32 accumulation.
    acc = None
    for dy in range(3):
        for dx in range(3):
            if stride == 1:
                patch = pad_ref[pl.ds(row0 + dy, tho), pl.ds(dx, wo), :]
            else:
                patch = pad_ref[pl.ds(row0 + dy, tho, stride=stride),
                                pl.ds(dx, wo, stride=stride), :]
            contrib = jnp.dot(patch.reshape(tho * wo, C), w_ref[3 * dy + dx],
                              preferred_element_type=jnp.float32)
            acc = contrib if acc is None else acc + contrib

    y = jnp.maximum(acc + b_ref[...], 0.0)
    o_ref[0] = y.reshape(tho, wo, cout).astype(o_ref.dtype)


# ------------------------------ wrappers ----------------------------------- #

def conv1x1_bias_relu(x2d, w, b, out_dtype=jnp.bfloat16):
    M, K = x2d.shape
    N = w.shape[1]
    tm = _pick_row_tile(M)
    return pl.pallas_call(
        _mm_bias_relu_kernel,
        out_shape=jax.ShapeDtypeStruct((M, N), out_dtype),
        grid=(M // tm,),
        in_specs=[pl.BlockSpec((tm, K), lambda i: (i, 0)),
                  pl.BlockSpec((K, N), lambda i: (0, 0)),
                  pl.BlockSpec((1, N), lambda i: (0, 0))],
        out_specs=pl.BlockSpec((tm, N), lambda i: (i, 0)),
        compiler_params=_mosaic_params(("parallel",)),
    )(x2d, w, b.reshape(1, N))


def conv1x1_bias_add_relu(x2d, w, b, res2d):
    M, K = x2d.shape
    N = w.shape[1]
    tm = _pick_row_tile(M)
    return pl.pallas_call(
        _mm_bias_add_relu_kernel,
        out_shape=jax.ShapeDtypeStruct((M, N), jnp.bfloat16),
        grid=(M // tm,),
        in_specs=[pl.BlockSpec((tm, K), lambda i: (i, 0)),
                  pl.BlockSpec((K, N), lambda i: (0, 0)),
                  pl.BlockSpec((1, N), lambda i: (0, 0)),
                  pl.BlockSpec((tm, N), lambda i: (i, 0))],
        out_specs=pl.BlockSpec((tm, N), lambda i: (i, 0)),
        compiler_params=_mosaic_params(("parallel",)),
    )(x2d, w, b.reshape(1, N), res2d)


def conv1x1_bias_ds_add_relu(x2d, w, b, xs2d, wd):
    M, K = x2d.shape
    N = w.shape[1]
    Ks = xs2d.shape[1]
    tm = _pick_row_tile(M)
    return pl.pallas_call(
        _mm_bias_ds_add_relu_kernel,
        out_shape=jax.ShapeDtypeStruct((M, N), jnp.bfloat16),
        grid=(M // tm,),
        in_specs=[pl.BlockSpec((tm, K), lambda i: (i, 0)),
                  pl.BlockSpec((K, N), lambda i: (0, 0)),
                  pl.BlockSpec((1, N), lambda i: (0, 0)),
                  pl.BlockSpec((tm, Ks), lambda i: (i, 0)),
                  pl.BlockSpec((Ks, N), lambda i: (0, 0))],
        out_specs=pl.BlockSpec((tm, N), lambda i: (i, 0)),
        compiler_params=_mosaic_params(("parallel",)),
    )(x2d, w, b.reshape(1, N), xs2d, wd)


def conv3x3_bias_relu(x_nhwc, w9, b, *, stride=1):
    N, H, W, C = x_nhwc.shape
    Cout = w9.shape[2]
    Ho = (H - 1) // stride + 1
    Wo = (W - 1) // stride + 1
    tho = _pick_out_row_block(Ho)
    kern = functools.partial(_conv3x3_bias_relu_kernel, stride=stride)
    return pl.pallas_call(
        kern,
        out_shape=jax.ShapeDtypeStruct((N, Ho, Wo, Cout), jnp.bfloat16),
        grid=(N, Ho // tho),
        in_specs=[pl.BlockSpec((1, H, W, C), lambda bb, r: (bb, 0, 0, 0)),
                  pl.BlockSpec((9, C, Cout), lambda bb, r: (0, 0, 0)),
                  pl.BlockSpec((1, Cout), lambda bb, r: (0, 0))],
        out_specs=pl.BlockSpec((1, tho, Wo, Cout), lambda bb, r: (bb, r, 0, 0)),
        scratch_shapes=[pltpu.VMEM((H + 2, W + 2, C), jnp.bfloat16)],
        # row-block axis carries the halo-scratch state -> "arbitrary"
        compiler_params=_mosaic_params(("parallel", "arbitrary")),
    )(x_nhwc, w9, b.reshape(1, Cout))


# --------------------------- Bottleneck forward ----------------------------- #

def bottleneck_forward_nhwc(x, params, *, stride=1):
    """x: (N, H, W, Cin) float32 NHWC.  Returns (N, Ho, Wo, Cout) bf16."""
    N, H, W, Cin = x.shape
    cin_p = params['w1'].shape[0]
    hid_p = params['w1'].shape[1]
    cout_p = params['w3'].shape[1]
    cout = params['cout']

    # Pad input channels to a lane multiple + cast to bf16 (one fused XLA op);
    # padded lanes are zero so they contribute nothing downstream.
    x_bf = jnp.pad(x, ((0, 0), (0, 0), (0, 0), (0, cin_p - Cin))).astype(jnp.bfloat16)

    # conv1 (1x1) + bn1 + relu  -> bf16 intermediate
    t = conv1x1_bias_relu(x_bf.reshape(N * H * W, cin_p), params['w1'], params['b1'])
    t = t.reshape(N, H, W, hid_p)

    # conv2 (3x3, padding=1, stride) + bn2 + relu -- strided outputs in-kernel
    t = conv3x3_bias_relu(t, params['w2'], params['b2'], stride=stride)
    Ho, Wo = t.shape[1], t.shape[2]
    Mo = N * Ho * Wo

    # conv3 (1x1) + bn3 + shortcut + relu (single fused kernel, bf16 output)
    if 'wd' in params:
        # TODO(synk): fuse this strided shortcut gather into the kernel via a
        # 4-D BlockSpec instead of materializing xs in the wrapper.
        xs = x_bf if stride == 1 else x_bf[:, ::stride, ::stride, :]
        out = conv1x1_bias_ds_add_relu(t.reshape(Mo, hid_p), params['w3'],
                                       params['b3'], xs.reshape(Mo, cin_p),
                                       params['wd'])
    else:
        assert stride == 1, "identity shortcut requires stride == 1"
        out = conv1x1_bias_add_relu(t.reshape(Mo, hid_p), params['w3'],
                                    params['b3'], x_bf.reshape(Mo, cin_p))
    return out.reshape(N, Ho, Wo, cout_p)[..., :cout]


def bottleneck_forward(x_nchw, params, *, stride=1):
    """PyTorch-compatible NCHW entry point.  (Keep the model NHWC end-to-end to
    drop these two full-tensor transposes.)"""
    # TODO(synk): fuse conv1 into the 3x3 kernel per row-chunk to drop the
    # (N,H,W,hid) intermediate HBM round trip entirely.
    x = jnp.transpose(x_nchw, (0, 2, 3, 1)).astype(jnp.float32)
    out = bottleneck_forward_nhwc(x, params, stride=stride)
    return jnp.transpose(out, (0, 3, 1, 2)).astype(jnp.float32)


# ----------------------------- parameter init ------------------------------- #

def init_params(key, in_channels, hid_channels, stride):
    out_channels = hid_channels * EXPANSION
    has_ds = (stride != 1) or (in_channels != out_channels)
    cin_p = _round_up(in_channels, _LANE)
    hid_p = _round_up(hid_channels, _LANE)
    cout_p = _round_up(out_channels, _LANE)
    ks = jax.random.split(key, 16)
    eps = 1e-5
    f32, bf16 = jnp.float32, jnp.bfloat16

    def conv_w(k, cout, cin, kh, kw):
        fan_in = cin * kh * kw
        return jax.random.normal(k, (cout, cin, kh, kw), f32) * (2.0 / fan_in) ** 0.5

    def bn(kg, kb, km, kv, c):
        gamma = 1.0 + 0.1 * jax.random.normal(kg, (c,), f32)
        beta = 0.1 * jax.random.normal(kb, (c,), f32)
        mean = 0.1 * jax.random.normal(km, (c,), f32)
        var = jax.random.uniform(kv, (c,), f32, minval=0.5, maxval=1.5)
        scale = gamma / jnp.sqrt(var + eps)
        bias = beta - mean * scale
        return scale, bias

    def pad_to(a, shape):
        return jnp.pad(a, [(0, s - d) for d, s in zip(a.shape, shape)])

    w1 = conv_w(ks[0], hid_channels, in_channels, 1, 1)[:, :, 0, 0]       # (hid, cin)
    w2 = conv_w(ks[1], hid_channels, hid_channels, 3, 3)                  # OIHW
    w3 = conv_w(ks[2], out_channels, hid_channels, 1, 1)[:, :, 0, 0]      # (cout, hid)
    s1, b1 = bn(ks[3], ks[4], ks[5], ks[6], hid_channels)
    s2, b2 = bn(ks[7], ks[8], ks[9], ks[10], hid_channels)
    s3, b3 = bn(ks[11], ks[12], ks[13], ks[14], out_channels)

    # Fold BN scale into conv weights (inference-mode BN): epilogues keep only
    # +bias and ReLU.
    w1f = w1.T * s1[None, :]                                              # (cin, hid)
    w2f = jnp.transpose(w2, (2, 3, 1, 0)) * s2[None, None, None, :]       # (3,3,ci,co)
    w3f = w3.T * s3[None, :]                                              # (hid, cout)

    params = dict(
        w1=pad_to(w1f, (cin_p, hid_p)).astype(bf16),
        w2=pad_to(w2f, (3, 3, hid_p, hid_p)).reshape(9, hid_p, hid_p).astype(bf16),
        w3=pad_to(w3f, (hid_p, cout_p)).astype(bf16),
        b1=pad_to(b1, (hid_p,)),
        b2=pad_to(b2, (hid_p,)),
        b3=pad_to(b3, (cout_p,)),
        cout=out_channels,
    )
    if has_ds:
        # Per the given module spec the downsample Sequential is Conv1x1 only (no BN).
        wd = conv_w(ks[15], out_channels, in_channels, 1, 1)[:, :, 0, 0]   # (cout, cin)
        params['wd'] = pad_to(wd.T, (cin_p, cout_p)).astype(bf16)          # (cin_p, cout_p)
    return params


# ------------------------------ pure-JAX ref -------------------------------- #

def _reference(x_nchw, params, *, stride=1):
    """Numerics-matched reference: bf16 matmul inputs, f32 accumulation, f32
    epilogues, bf16 intermediates/outputs — same precision policy as kernels."""
    f32, bf16 = jnp.float32, jnp.bfloat16
    x = jnp.transpose(x_nchw, (0, 2, 3, 1)).astype(f32)
    cin_p = params['w1'].shape[0]
    hid_p = params['w1'].shape[1]
    cout = params['cout']
    xb = jnp.pad(x, ((0, 0), (0, 0), (0, 0), (0, cin_p - x.shape[-1]))).astype(bf16)

    t = jnp.einsum('nhwc,cd->nhwd', xb, params['w1'], preferred_element_type=f32)
    t = jnp.maximum(t + params['b1'], 0.0).astype(bf16)

    w2 = params['w2'].reshape(3, 3, hid_p, hid_p)
    t = jax.lax.conv_general_dilated(t, w2, (stride, stride),
                                     padding=((1, 1), (1, 1)),
                                     dimension_numbers=('NHWC', 'HWIO', 'NHWC'),
                                     preferred_element_type=f32)
    t = jnp.maximum(t + params['b2'], 0.0).astype(bf16)

    y = jnp.einsum('nhwc,cd->nhwd', t, params['w3'], preferred_element_type=f32)
    y = y + params['b3']
    if 'wd' in params:
        xs = xb[:, ::stride, ::stride, :]
        y = y + jnp.einsum('nhwc,cd->nhwd', xs, params['wd'],
                           preferred_element_type=f32)
    else:
        y = y + xb.astype(f32)
    y = jnp.maximum(y, 0.0).astype(bf16)
    out = y[..., :cout].astype(f32)
    return jnp.transpose(out, (0, 3, 1, 2))


# --------------------------------- main ------------------------------------- #

if __name__ == "__main__":
    key = jax.random.PRNGKey(0)

    configs = [
        # (batch, in_channels, hid_channels, spatial, stride)
        (2, 16, 8, 16, 1),   # projection shortcut (1x1 downsample), stride 1
        (2, 32, 8, 16, 1),   # identity shortcut
        (2, 16, 8, 16, 2),   # projection shortcut with spatial stride 2
    ]
    for idx, (batch, cin, hid, sp, stride) in enumerate(configs):
        k_x, k_p = jax.random.split(jax.random.fold_in(key, idx))
        x = jax.random.normal(k_x, (batch, cin, sp, sp), jnp.float32)   # NCHW
        params = init_params(k_p, cin, hid, stride)

        out = jax.block_until_ready(bottleneck_forward(x, params, stride=stride))
        ref = jax.block_until_ready(_reference(x, params, stride=stride))

        expect = (batch, hid * EXPANSION, sp // stride, sp // stride)
        assert out.shape == expect, f"bad shape {out.shape} vs {expect} (config {idx})"
        assert jnp.allclose(out, ref, atol=2e-2, rtol=2e-2), \
            f"mismatch vs pure-JAX reference (config {idx})"

    print("KERNEL_OK")
</pallas_src>

<mosaic_0001>
module attributes {stable_mosaic.version = 11 : i64} {
  func.func @_mm_bias_relu_kernel(%arg0: i32, %arg1: memref<256x128xbf16, #tpu.memory_space<vmem>>, %arg2: memref<128x128xbf16, #tpu.memory_space<vmem>>, %arg3: memref<1x128xf32, #tpu.memory_space<vmem>>, %arg4: memref<256x128xbf16, #tpu.memory_space<vmem>>) attributes {dimension_semantics = [#tpu.dimension_semantics<parallel>], iteration_bounds = array<i64: 2>, scalar_prefetch = 0 : i64, scratch_operands = 0 : i64, tpu.core_type = #tpu.core_type<tc>, window_params = [{transform_indices = @transform_0, window_bounds = array<i64: 256, 128>}, {pipeline_mode = #tpu.pipeline_mode<synchronous>, transform_indices = @transform_1, window_bounds = array<i64: 128, 128>}, {pipeline_mode = #tpu.pipeline_mode<synchronous>, transform_indices = @transform_2, window_bounds = array<i64: 1, 128>}, {transform_indices = @transform_3, window_bounds = array<i64: 256, 128>}]} {
    %c0 = arith.constant 0 : index
    %c0_0 = arith.constant 0 : index
    %0 = vector.load %arg1[%c0, %c0_0] : memref<256x128xbf16, #tpu.memory_space<vmem>>, vector<256x128xbf16>
    %c0_1 = arith.constant 0 : index
    %c0_2 = arith.constant 0 : index
    %1 = vector.load %arg2[%c0_1, %c0_2] : memref<128x128xbf16, #tpu.memory_space<vmem>>, vector<128x128xbf16>
    %cst = arith.constant dense<0.000000e+00> : vector<256x128xf32>
    %2 = tpu.matmul %0, %1, %cst {dimension_numbers = #tpu.dot_dimension_numbers<[1], [0], [0], [1], [0, 0, 1, 1], [], []>} : vector<256x128xbf16>, vector<128x128xbf16>, vector<256x128xf32> -> vector<256x128xf32>
    %c0_3 = arith.constant 0 : index
    %c0_4 = arith.constant 0 : index
    %3 = vector.load %arg3[%c0_3, %c0_4] : memref<1x128xf32, #tpu.memory_space<vmem>>, vector<1x128xf32>
    %4 = vector.broadcast %3 : vector<1x128xf32> to vector<256x128xf32>
    %5 = arith.addf %2, %4 : vector<256x128xf32>
    %cst_5 = arith.constant 0.000000e+00 : f32
    %6 = vector.broadcast %cst_5 : f32 to vector<256x128xf32>
    %7 = arith.maximumf %5, %6 : vector<256x128xf32>
    %8 = arith.truncf %7 : vector<256x128xf32> to vector<256x128xbf16>
    %c0_6 = arith.constant 0 : index
    %c0_7 = arith.constant 0 : index
    %9 = vector.load %arg4[%c0_6, %c0_7] : memref<256x128xbf16, #tpu.memory_space<vmem>>, vector<256x128xbf16>
    tpu.vector_store %arg4[%c0_6, %c0_7], %8 {strides = array<i32>} : memref<256x128xbf16, #tpu.memory_space<vmem>>, vector<256x128xbf16>,
    return
  }
  func.func @transform_0(%arg0: i32) -> (i32, i32) {
    %c0_i32 = arith.constant 0 : i32
    %c0_i32_0 = arith.constant 0 : i32
    return %arg0, %c0_i32 : i32, i32
  }
  func.func @transform_1(%arg0: i32) -> (i32, i32) {
    %c0_i32 = arith.constant 0 : i32
    %c0_i32_0 = arith.constant 0 : i32
    %c0_i32_1 = arith.constant 0 : i32
    return %c0_i32, %c0_i32_0 : i32, i32
  }
  func.func @transform_2(%arg0: i32) -> (i32, i32) {
    %c0_i32 = arith.constant 0 : i32
    %c0_i32_0 = arith.constant 0 : i32
    %c0_i32_1 = arith.constant 0 : i32
    return %c0_i32, %c0_i32_0 : i32, i32
  }
  func.func @transform_3(%arg0: i32) -> (i32, i32) {
    %c0_i32 = arith.constant 0 : i32
    %c0_i32_0 = arith.constant 0 : i32
    return %arg0, %c0_i32 : i32, i32
  }
}

</mosaic_0001>

<bundles_post_ra>
// kernel: tpu_custom_call.1
= control target key start
LH: loop header
LB: loop body
LE: loop exit
PB: predicated region body
PF: predicated region fallthrough
CT: control target
= control target key end

     0   :  { %8 = vsyncpa [#allocation3], 0  ;;  %s1766_s0 = inlined_call_operand.hbm [shape: bf16[512,128], index: 0, kind: input, shape index: {}]   ;;  %s1767_s1 = inlined_call_operand.hbm [shape: bf16[128,128], index: 1, kind: input, shape index: {}]   ;;  %s1768_s2 = inlined_call_operand.hbm [shape: f32[1,128], index: 2, kind: input, shape index: {}]   ;;  %s1769_s3 = inlined_call_operand.hbm [shape: bf16[512,128], index: 3, kind: output, shape index: {}]  }
   0x1   :  { %10 = vsyncpa [#allocation3 + $0x1], 0 }
   0x2   :  { %11 = vsyncpa [#allocation6], 0 }
   0x3   :  { %12 = vsyncpa [#allocation4], 0 }
   0x4   :  { %14 = vsyncpa [#allocation4 + $0x1], 0  ;;  %s1450_s12 = smov 0   ;;  %s1452_s13 = smov 0  }
   0x5   :  { %s1454_s14 = smov 0   ;;  %s1456_s15 = smov 0  }
   0x6 LB: > { %s1471_s16 = sadd.s32 4294967295, %s1420_s15   ;;  %s877_s17 = sadd.s32 4294967294, %s1420_s15   ;;  %s1420_s15 = sphi %s1456_s15, %s1789_s15   ;;  %s1416_s14 = sphi %s1454_s14, %s1788_s14   ;;  %s1412_s13 = sphi %s1452_s13, %s1787_s13   ;;  %s1408_s12 = sphi %s1450_s12, %s1786_s12  }
   0x7   : > { %p40_p0 = scmp.ne.s32.totalorder %s1412_s13, %s1408_s12  ;;  %p1770_p1 = scmp.eq.s32.totalorder %s1471_s16, 0 }
   0x8   : > { %p112_p3 = scmp.eq.s32.totalorder %s877_s17, 1  ;;  %p878_p5 = scmp.ge.s32.totalorder %s1420_s15, 1 }
   0x9   : > { %p1480_p4 = por %p1770_p1, %p40_p0  ;;  %p119_p7 = scmp.lt.s32.totalorder %s1420_s15, 3 }
   0xa   : > { %p1485_p6 = por %p112_p3, %p40_p0  ;;  %s1422_s21 = smov [#allocation5]  }
   0xb   : > { %s1773_s18 = scalar_select %p1480_p4, 1, 0 }
   0xc   : > { %s1774_s19 = scalar_select %p1485_p6, 1, 0 }
   0xd   : > { %p1490_p8 = pnand %p878_p5, %p119_p7  ;;  %s131_s22 = sshll.u32 %s1422_s21, 4  ;;  %s1494_s22 = int_to_ptr.vmem [resolvable:$true] %s131_s22 }
   0xe   : > { %s1423_s24 = smov [#allocation7]   ;;  %s1264_s28 = scalar_lea.hbm %s1767_s1, 1024 }
   0xf   : > { %p1181_p9 = pneg %p1490_p8  ;;  %s145_s25 = sshll.u32 %s1423_s24, 4  ;;  %s1505_s25 = int_to_ptr.vmem [resolvable:$true] %s145_s25 }
  0x10   : > { %p1265_p12 = scmp.ne.s32.totalorder %s1767_s1, %s1264_s28  ;;  %p1271_p5 = scmp.lt.u32.totalorder %s1264_s28, %s1767_s1 }
  0x11   : > { %p1501_p11 = pnand %p1181_p9, %p1770_p1 }
  0x13   : > { %p1266_p13 = pneg %p1501_p11 }
  0x15   : > { %p1267_p0 = pnand %p1266_p13, %p1265_p12 }
  0x17   : > { %p1268_p3 = pneg %p1267_p0 }
  0x19   : > { %p1273_p7 = pnand %p1271_p5, %p1268_p3 }
  0x1b   : > { %1276 = shalt.err (!%p1273_p7)
}
  0x1c   : > { %s1277_s6 = scalar_lea.vmem %s1494_s22, 1024  ;;  %p1285_p2 = scmp.lt.s32.totalorder %s1494_s22, %s1494_s22 }
  0x1d   : > { %p1278_p9 = scmp.ne.s32.totalorder %s1494_s22, %s1277_s6  ;;  %p1286_p12 = scmp.lt.s32.totalorder %s1277_s6, %s1277_s6 }
  0x1f   : > { %p1280_p10 = pnand %p1278_p9, %p1266_p13  ;;  %p1287_p0 = por %p1286_p12, %p1285_p2 }
  0x21   : > { %p1281_p1 = pneg %p1280_p10 }
  0x23   : > { %p1288_p6 = pnand %p1287_p0, %p1281_p1 }
  0x25   : > { %1291 = shalt.err (!%p1288_p6)
}
  0x26   : > { %s1424_s7 = smov 64   ;;  %s1425_s8 = smov 4  }
  0x27   : > { %1184 = dma.hbm_to_vmem [thread:$0]  (!%p1501_p11), %s1767_s1, 1024, %s1494_s22, [#allocation6], %s1424_s7, %s1424_s7, %s1425_s8  }
  0x28   : > { %s1292_s21 = scalar_lea.hbm %s1768_s2, 16 }
  0x29   : > { %p1293_p1 = scmp.ne.s32.totalorder %s1768_s2, %s1292_s21  ;;  %p1299_p10 = scmp.lt.u32.totalorder %s1292_s21, %s1768_s2 }
  0x2b   : > { %p1295_p2 = pnand %p1293_p1, %p1266_p13 }
  0x2d   : > { %p1296_p6 = pneg %p1295_p2 }
  0x2f   : > { %p1301_p3 = pnand %p1299_p10, %p1296_p6 }
  0x31   : > { %1304 = shalt.err (!%p1301_p3)
}
  0x32   : > { %s1305_s22 = scalar_lea.vmem %s1505_s25, 16  ;;  %s1312_s29 = scalar_lea.vmem %s1505_s25, 32 }
  0x33   : > { %p1306_p5 = scmp.ne.s32.totalorder %s1505_s25, %s1305_s22  ;;  %p1313_p12 = scmp.lt.s32.totalorder %s1505_s25, %s1505_s25 }
  0x34   : > { %p1314_p0 = scmp.lt.s32.totalorder %s1312_s29, %s1305_s22 }
  0x35   : > { %p1308_p7 = pnand %p1306_p5, %p1266_p13 }
  0x36   : > { %p1315_p1 = por %p1314_p0, %p1313_p12 }
  0x37   : > { %p1309_p9 = pneg %p1308_p7 }
  0x39   : > { %p1316_p2 = pnand %p1315_p1, %p1309_p9 }
  0x3b   : > { %1319 = shalt.err (!%p1316_p2)
}
  0x3c   : > { %1187 = dma.hbm_to_vmem [thread:$0]  (!%p1501_p11), %s1768_s2, 16, %s1505_s25, [#allocation6]  }
  0x3d   : > { %s1564_s5 = sadd.s32 1, %s1420_s15   ;;  %s27_s23 = sadd.s32 1, %s1416_s14 }
  0x3e   : > { %s24_s6 = ssub.s32 %s1420_s15, %s1564_s5  ;;  %p34_p13 = scmp.ne.s32.totalorder %s1416_s14, %s1412_s13 }
  0x3f   : > { %p25_p6 = scmp.eq.s32.totalorder %s24_s6, 0  ;;  %p35_p10 = scmp.eq.s32.totalorder %s1420_s15, 0 }
  0x40   : > { %p1777_p3 = scmp.eq.s32.totalorder %s1471_s16, 1  ;;  %p1198_p7 = scmp.lt.s32.totalorder %s1420_s15, 2 }
  0x41   : > { %s1580_s10 = scalar_select %p25_p6, %s1416_s14, %s27_s23  }
  0x42   : > { %p1574_p5 = por %p1777_p3, %p34_p13  ;;  %p36_p9 = por %p35_p10, %p34_p13 }
  0x43   : > { %s156_s11 = sand.u32 1, %s1416_s14   ;;  %s952_s25 = sshll.u32 %s1420_s15, 11 }
  0x44   : > { %s1778_s9 = scalar_select %p1574_p5, 1, 0 }
  0x45   : > { %s882_s17 = sshll.u32 %s156_s11, 7  ;;  %s1587_s26 = scalar_lea.hbm %s1766_s0, %s952_s25 }
  0x46   : > { %s160_s27 = scalar_lea.vmem [#allocation2], %s882_s17  ;;  %p1591_p11 = pnand %p1198_p7, %p36_p9 }
  0x47   : > { %s167_s28 = sshll.u32 %s160_s27, 4  ;;  %s1595_s29 = scalar_lea.sflag [#allocation3], %s156_s11  ;;  %s1589_s28 = int_to_ptr.vmem [resolvable:$true] %s167_s28 }
  0x48   : > { %s1320_s30 = scalar_lea.hbm %s1587_s26, 2048  ;;  %p1322_p0 = pneg %p1591_p11 }
  0x49   : > { %p1321_p12 = scmp.ne.s32.totalorder %s1587_s26, %s1320_s30  ;;  %s1325_s6 = scalar_lea.hbm %s1766_s0, 4096 }
  0x4a   : > { %p1326_p13 = scmp.lt.u32.totalorder %s1587_s26, %s1766_s0  ;;  %p1327_p6 = scmp.lt.u32.totalorder %s1325_s6, %s1320_s30 }
  0x4b   : > { %p1323_p1 = pnand %p1322_p0, %p1321_p12  ;;  %p1329_p3 = scmp.lt.u32.totalorder %s1320_s30, %s1587_s26 }
  0x4c   : > { %p1328_p10 = por %p1327_p6, %p1326_p13 }
  0x4d   : > { %p1324_p2 = pneg %p1323_p1 }
  0x4e   : > { %p1330_p7 = por %p1329_p3, %p1328_p10 }
  0x50   : > { %p1331_p9 = pnand %p1330_p7, %p1324_p2 }
  0x52   : > { %1334 = shalt.err (!%p1331_p9)
}
  0x53   : > { %s1335_s11 = scalar_lea.vmem %s1589_s28, 2048  ;;  %s1426_s21 = smov [#allocation2]  }
  0x54   : > { %p1336_p12 = scmp.ne.s32.totalorder %s1589_s28, %s1335_s11  ;;  %s1340_s24 = sshll.u32 %s1426_s21, 4  ;;  %s1341_s24 = int_to_ptr.vmem [resolvable:$false] %s1340_s24 }
  0x55   : > { %s1342_s27 = scalar_lea.vmem %s1341_s24, 4096  ;;  %p1343_p4 = scmp.lt.s32.totalorder %s1589_s28, %s1341_s24 }
  0x56   : > { %p1338_p1 = pnand %p1336_p12, %p1322_p0  ;;  %p1344_p13 = scmp.lt.s32.totalorder %s1342_s27, %s1335_s11 }
  0x58   : > { %p1339_p5 = pneg %p1338_p1  ;;  %p1345_p6 = por %p1344_p13, %p1343_p4 }
  0x5a   : > { %p1346_p10 = pnand %p1345_p6, %p1339_p5 }
  0x5c   : > { %1349 = shalt.err (!%p1346_p10)
}
  0x5d   : > { %1191 = dma.hbm_to_vmem [thread:$0]  (!%p1591_p11), %s1587_s26, 2048, %s1589_s28, %s1595_s29, %s1424_s7, %s1424_s7, %s1425_s8  }
  0x5e   : > { %179 = sbr.rel (%p1490_p8) target bundleno = 398 (0x18e), region = 32  ;;  %s1629_s30 = sand.u32 (!%p1490_p8), 1, %s1412_s13  }
  0x5f   : > { %s886_s4 = sshll.u32 (!%p1490_p8), %s1629_s30, 7  ;;  %s182_s23 = scalar_lea.sflag (!%p1490_p8), [#allocation3], %s1629_s30 }
  0x60   : > { %s1635_s22 = scalar_lea.vmem (!%p1490_p8), [#allocation2], %s886_s4  ;;  %p1780_p4 = scmp.ne.s32.totalorder (!%p1490_p8), %s1773_s18, 0 }
  0x65   : > { %1395 = dma.done.wait (%p1780_p4), %s182_s23, 2048  }
  0x66   : > { %1397 = vsyncadd (%p1780_p4), %s182_s23, 4294965248  ;;  %p1781_p5 = scmp.eq.s32.totalorder %s1471_s16, 0 }
  0x68   : > { %1399 = dma.done.wait (%p1781_p5), [#allocation6], 1040   ;;  %p1782_p8 = pmov %p1781_p5 }
  0x69   : > { %v1240_v0 = vld [vmem:[#allocation5] sm:$0xff]   ;;  %v1241_v1 = vld [vmem:[#allocation5 + $0x8] sm:$0xff]   ;;  %v1242_v2 = vld [vmem:[#allocation5 + $0x10] sm:$0xff]   ;;  %s1673_s18 = scalar_lea.vmem [#allocation8], %s886_s4  ;;  %s985_s20 = sshll.u32 %s1471_s16, 11 }
  0x6a   : > { %1401 = vsyncadd (%p1782_p8), [#allocation6], 4294966256  ;;  %1105 = vmatprep.subr.bf16.mxu0 %v1240_v0  ;;  %1153 = vmatprep.subr.bf16.mxu1 %v1240_v0  ;;  %v1243_v3 = vld [vmem:[#allocation5 + $0x18] sm:$0xff]   ;;  %v1248_v4 = vld [vmem:[%s1635_s22] sm:$0xff]   ;;  %s785_s7 = sshll.u32 %s1673_s18, 4  ;;  %s1716_s16 = scalar_lea.hbm %s1769_s3, %s985_s20  ;;  %s1718_s7 = int_to_ptr.vmem [resolvable:$true] %s785_s7 }
  0x6b   : > { %1106 = vmatpush3.bf16.msra.mxu0 %v1240_v0  ;;  %1161 = vmatpush3.bf16.msra.mxu1 %v1240_v0  ;;  %v1249_v5 = vld [vmem:[%s1635_s22 + $0x40] sm:$0xff]   ;;  %v1245_v7 = vld [vmem:[#allocation5 + $0x28] sm:$0xff]   ;;  %v1246_v8 = vld [vmem:[#allocation5 + $0x30] sm:$0xff]   ;;  %s772_s28 = scalar_lea.sflag [#allocation4], %s1629_s30  ;;  %s1350_s29 = scalar_lea.vmem %s1718_s7, 2048 }
  0x6c   : > { %1107 = vmatprep.subr.bf16.mxu0 %v1241_v1  ;;  %1154 = vmatprep.subr.bf16.mxu1 %v1241_v1  ;;  %v1244_v6 = vld [vmem:[#allocation5 + $0x20] sm:$0xff]   ;;  %v1247_v9 = vld [vmem:[#allocation5 + $0x38] sm:$0xff]   ;;  %v1250_v10 = vld [vmem:[%s1635_s22 + $0x8] sm:$0xff]   ;;  %p1351_p11 = scmp.ne.s32.totalorder %s1718_s7, %s1350_s29  ;;  %p1783_p0 = scmp.ne.s32.totalorder %s1778_s9, 0 }
  0x6d   : > { %1121 = vmatprep.mubr.bf16.mxu0 %v1248_v4  ;;  %1137 = vmatprep.mubr.bf16.mxu1 %v1249_v5  ;;  %v1251_v11 = vld [vmem:[%s1635_s22 + $0x48] sm:$0xff]   ;;  %v1252_v12 = vld [vmem:[%s1635_s22 + $0x10] sm:$0xff]   ;;  %v1254_v14 = vld [vmem:[%s1635_s22 + $0x18] sm:$0xff]   ;;  %s1427_s6 = smov [#allocation8]  }
  0x6e   : > { %v1253_v13 = vld [vmem:[%s1635_s22 + $0x50] sm:$0xff]   ;;  %v1255_v15 = vld [vmem:[%s1635_s22 + $0x58] sm:$0xff]   ;;  %v1256_v16 = vld [vmem:[%s1635_s22 + $0x20] sm:$0xff]   ;;  %p1352_p2 = pnand %p1351_p11, %p1783_p0  ;;  %s1354_s17 = sshll.u32 %s1427_s6, 4  ;;  %s1355_s17 = int_to_ptr.vmem [resolvable:$false] %s1354_s17 }
  0x6f   : > { %1108 = vmatpush3.bf16.msra.mxu0 %v1241_v1  ;;  %1162 = vmatpush3.bf16.msra.mxu1 %v1241_v1  ;;  %v1257_v17 = vld [vmem:[%s1635_s22 + $0x60] sm:$0xff]   ;;  %v1258_v18 = vld [vmem:[%s1635_s22 + $0x28] sm:$0xff]   ;;  %v1260_v20 = vld [vmem:[%s1635_s22 + $0x30] sm:$0xff]   ;;  %s1356_s25 = scalar_lea.vmem %s1355_s17, 4096  ;;  %p1357_p7 = scmp.lt.s32.totalorder %s1718_s7, %s1355_s17 }
  0x70   : > { %1109 = vmatprep.subr.bf16.mxu0 %v1242_v2  ;;  %1155 = vmatprep.subr.bf16.mxu1 %v1242_v2  ;;  %v1259_v19 = vld [vmem:[%s1635_s22 + $0x68] sm:$0xff]   ;;  %v1261_v21 = vld [vmem:[%s1635_s22 + $0x70] sm:$0xff]   ;;  %v1262_v22 = vld [vmem:[%s1635_s22 + $0x38] sm:$0xff]   ;;  %p1353_p3 = pneg %p1352_p2  ;;  %p1358_p9 = scmp.lt.s32.totalorder %s1356_s25, %s1350_s29 }
  0x71   : > { %v1263_v23 = vld [vmem:[%s1635_s22 + $0x78] sm:$0xff]   ;;  %v1661_v24 = vld [vmem:[#allocation7] ss:$0 sm:$0xff] }
  0x72   : > { %p1359_p12 = por %p1358_p9, %p1357_p7 }
  0x73   : > { %1110 = vmatpush3.bf16.msra.mxu0 %v1242_v2  ;;  %1163 = vmatpush3.bf16.msra.mxu1 %v1242_v2 }
  0x74   : > { %1111 = vmatprep.subr.bf16.mxu0 %v1243_v3  ;;  %1156 = vmatprep.subr.bf16.mxu1 %v1243_v3  ;;  %p1360_p1 = pnand %p1359_p12, %p1353_p3 }
  0x77   : > { %1112 = vmatpush3.bf16.msra.mxu0 %v1243_v3  ;;  %1164 = vmatpush3.bf16.msra.mxu1 %v1243_v3 }
  0x78   : > { %1113 = vmatprep.subr.bf16.mxu0 %v1244_v6  ;;  %1157 = vmatprep.subr.bf16.mxu1 %v1244_v6 }
  0x7b   : > { %1114 = vmatpush3.bf16.msra.mxu0 %v1244_v6  ;;  %1165 = vmatpush3.bf16.msra.mxu1 %v1244_v6 }
  0x7c   : > { %1115 = vmatprep.subr.bf16.mxu0 %v1245_v7  ;;  %1158 = vmatprep.subr.bf16.mxu1 %v1245_v7 }
  0x7f   : > { %1116 = vmatpush3.bf16.msra.mxu0 %v1245_v7  ;;  %1166 = vmatpush3.bf16.msra.mxu1 %v1245_v7 }
  0x80   : > { %1117 = vmatprep.subr.bf16.mxu0 %v1246_v8  ;;  %1159 = vmatprep.subr.bf16.mxu1 %v1246_v8 }
  0x83   : > { %1118 = vmatpush3.bf16.msra.mxu0 %v1246_v8  ;;  %1167 = vmatpush3.bf16.msra.mxu1 %v1246_v8 }
  0x84   : > { %1119 = vmatprep.subr.bf16.mxu0 %v1247_v9  ;;  %1160 = vmatprep.subr.bf16.mxu1 %v1247_v9 }
  0x87   : > { %1120 = vmatpush3.bf16.msra.mxu0 %v1247_v9  ;;  %1168 = vmatpush3.bf16.msra.mxu1 %v1247_v9 }
  0x8a   : > { %1122 = vmatmul.mubr.bf16.vlgmr.msra.gmra.mrb[0].mxu0 %v1250_v10  ;;  %1138 = vmatmul.mubr.bf16.vlgmr.msra.gmra.mrb[0].mxu1 %v1251_v11 }
  0x8b   : > { %1125 = vmatprep.mubr.bf16.mxu0 %v1252_v12  ;;  %1141 = vmatprep.mubr.bf16.mxu1 %v1253_v13 }
  0x92   : > { %1126 = vmatmul.mubr.bf16.gmra.mrb[4].mxu0 %v1254_v14  ;;  %1142 = vmatmul.mubr.bf16.gmra.mrb[4].mxu1 %v1255_v15 }
  0x93   : > { %1129 = vmatprep.mubr.bf16.mxu0 %v1256_v16  ;;  %1145 = vmatprep.mubr.bf16.mxu1 %v1257_v17 }
  0x9a   : > { %1130 = vmatmul.mubr.bf16.gmra.mrb[8].mxu0 %v1258_v18  ;;  %1146 = vmatmul.mubr.bf16.gmra.mrb[8].mxu1 %v1259_v19 }
  0x9b   : > { %1133 = vmatprep.mubr.bf16.mxu0 %v1260_v20  ;;  %1149 = vmatprep.mubr.bf16.mxu1 %v1261_v21 }
  0xa2   : > { %1134 = vmatmul.mubr.bf16.gmra.mrb[12].mxu0 %v1262_v22  ;;  %1150 = vmatmul.mubr.bf16.gmra.mrb[12].mxu1 %v1263_v23 }
 0x15d   : > { %v1123_v25 = vpop.f32.mrb[0].mxu0  ;;  %v1139_v26 = vpop.f32.mrb[0].mxu1 }
 0x15e   : > { %v461_v27 = vadd.f32 %v1123_v25, %v1661_v24  ;;  %v525_v28 = vadd.f32 %v1139_v26, %v1661_v24  ;;  %v452_v29 = vpop.f32.mrb[1].mxu0  ;;  %v516_v30 = vpop.f32.mrb[1].mxu1 }
 0x15f   : > { %v453_v31 = vadd.f32 %v1661_v24, %v452_v29  ;;  %v517_v32 = vadd.f32 %v1661_v24, %v516_v30  ;;  %v1124_v33 = vpop.f32.mrb[2].mxu0  ;;  %v1140_v34 = vpop.f32.mrb[2].mxu1 }
 0x160   : > { %v464_v35 = vadd.f32 %v1124_v33, %v1661_v24  ;;  %v528_v36 = vadd.f32 %v1140_v34, %v1661_v24  ;;  %v455_v37 = vpop.f32.mrb[3].mxu0  ;;  %v519_v38 = vpop.f32.mrb[3].mxu1  ;;  %v581_v41 = vmax.f32 %v461_v27, 0.0  ;;  %v597_v42 = vmax.f32 %v525_v28, 0.0 }
 0x161   : > { %v456_v39 = vadd.f32 %v1661_v24, %v455_v37  ;;  %v520_v40 = vadd.f32 %v1661_v24, %v519_v38  ;;  %v579_v45 = vmax.f32 %v453_v31, 0.0  ;;  %v595_v46 = vmax.f32 %v517_v32, 0.0 }
 0x162   : > { %v582_v43 = vmax.f32 %v464_v35, 0.0  ;;  %v598_v44 = vmax.f32 %v528_v36, 0.0 }
 0x163   : > { %v580_v47 = vmax.f32 %v456_v39, 0.0  ;;  %v596_v48 = vmax.f32 %v520_v40, 0.0 }
 0x164   : > { %v994_v49 = vpack.c.bf16 %v582_v43, %v581_v41  ;;  %v1034_v50 = vpack.c.bf16 %v598_v44, %v597_v42 }
 0x165   : > { %v989_v51 = vpack.c.bf16 %v580_v47, %v579_v45  ;;  %v1029_v52 = vpack.c.bf16 %v596_v48, %v595_v46  ;;  %v1127_v53 = vpop.f32.mrb[4].mxu0  ;;  %v1143_v54 = vpop.f32.mrb[4].mxu1 }
 0x166   : > { %1066 = vst [vmem:[%s1673_s18 + $0x8] sm:$0xff] %v994_v49   ;;  %1074 = vst [vmem:[%s1673_s18 + $0x48] sm:$0xff] %v1034_v50   ;;  %v477_v55 = vadd.f32 %v1127_v53, %v1661_v24  ;;  %v541_v56 = vadd.f32 %v1143_v54, %v1661_v24  ;;  %v468_v57 = vpop.f32.mrb[5].mxu0  ;;  %v532_v58 = vpop.f32.mrb[5].mxu1 }
 0x167   : > { %990 = vst [vmem:[%s1673_s18] sm:$0xff] %v989_v51   ;;  %1073 = vst [vmem:[%s1673_s18 + $0x40] sm:$0xff] %v1029_v52   ;;  %v469_v59 = vadd.f32 %v1661_v24, %v468_v57  ;;  %v533_v60 = vadd.f32 %v1661_v24, %v532_v58  ;;  %v1128_v61 = vpop.f32.mrb[6].mxu0  ;;  %v1144_v62 = vpop.f32.mrb[6].mxu1 }
 0x168   : > { %v480_v63 = vadd.f32 %v1128_v61, %v1661_v24  ;;  %v544_v0 = vadd.f32 %v1144_v62, %v1661_v24  ;;  %v471_v1 = vpop.f32.mrb[7].mxu0  ;;  %v535_v2 = vpop.f32.mrb[7].mxu1  ;;  %v585_v5 = vmax.f32 %v477_v55, 0.0  ;;  %v601_v6 = vmax.f32 %v541_v56, 0.0 }
 0x169   : > { %v472_v3 = vadd.f32 %v1661_v24, %v471_v1  ;;  %v536_v4 = vadd.f32 %v1661_v24, %v535_v2  ;;  %v583_v9 = vmax.f32 %v469_v59, 0.0  ;;  %v599_v10 = vmax.f32 %v533_v60, 0.0 }
 0x16a   : > { %v586_v7 = vmax.f32 %v480_v63, 0.0  ;;  %v602_v8 = vmax.f32 %v544_v0, 0.0 }
 0x16b   : > { %v584_v11 = vmax.f32 %v472_v3, 0.0  ;;  %v600_v12 = vmax.f32 %v536_v4, 0.0 }
 0x16c   : > { %v1004_v13 = vpack.c.bf16 %v586_v7, %v585_v5  ;;  %v1044_v14 = vpack.c.bf16 %v602_v8, %v601_v6 }
 0x16d   : > { %v999_v15 = vpack.c.bf16 %v584_v11, %v583_v9  ;;  %v1039_v16 = vpack.c.bf16 %v600_v12, %v599_v10  ;;  %v1131_v17 = vpop.f32.mrb[8].mxu0  ;;  %v1147_v18 = vpop.f32.mrb[8].mxu1 }
 0x16e   : > { %1068 = vst [vmem:[%s1673_s18 + $0x18] sm:$0xff] %v1004_v13   ;;  %1076 = vst [vmem:[%s1673_s18 + $0x58] sm:$0xff] %v1044_v14   ;;  %v493_v19 = vadd.f32 %v1131_v17, %v1661_v24  ;;  %v557_v20 = vadd.f32 %v1147_v18, %v1661_v24  ;;  %v484_v21 = vpop.f32.mrb[9].mxu0  ;;  %v548_v22 = vpop.f32.mrb[9].mxu1 }
 0x16f   : > { %1067 = vst [vmem:[%s1673_s18 + $0x10] sm:$0xff] %v999_v15   ;;  %1075 = vst [vmem:[%s1673_s18 + $0x50] sm:$0xff] %v1039_v16   ;;  %v485_v23 = vadd.f32 %v1661_v24, %v484_v21  ;;  %v549_v25 = vadd.f32 %v1661_v24, %v548_v22  ;;  %v1132_v26 = vpop.f32.mrb[10].mxu0  ;;  %v1148_v27 = vpop.f32.mrb[10].mxu1 }
 0x170   : > { %v496_v28 = vadd.f32 %v1132_v26, %v1661_v24  ;;  %v560_v29 = vadd.f32 %v1148_v27, %v1661_v24  ;;  %v487_v30 = vpop.f32.mrb[11].mxu0  ;;  %v551_v31 = vpop.f32.mrb[11].mxu1  ;;  %v589_v34 = vmax.f32 %v493_v19, 0.0  ;;  %v605_v35 = vmax.f32 %v557_v20, 0.0 }
 0x171   : > { %v488_v32 = vadd.f32 %v1661_v24, %v487_v30  ;;  %v552_v33 = vadd.f32 %v1661_v24, %v551_v31  ;;  %v587_v38 = vmax.f32 %v485_v23, 0.0  ;;  %v603_v39 = vmax.f32 %v549_v25, 0.0 }
 0x172   : > { %v590_v36 = vmax.f32 %v496_v28, 0.0  ;;  %v606_v37 = vmax.f32 %v560_v29, 0.0 }
 0x173   : > { %v588_v40 = vmax.f32 %v488_v32, 0.0  ;;  %v604_v41 = vmax.f32 %v552_v33, 0.0 }
 0x174   : > { %v1014_v42 = vpack.c.bf16 %v590_v36, %v589_v34  ;;  %v1054_v43 = vpack.c.bf16 %v606_v37, %v605_v35 }
 0x175   : > { %v1009_v44 = vpack.c.bf16 %v588_v40, %v587_v38  ;;  %v1049_v45 = vpack.c.bf16 %v604_v41, %v603_v39  ;;  %v1135_v46 = vpop.f32.mrb[12].mxu0  ;;  %v1151_v47 = vpop.f32.mrb[12].mxu1 }
 0x176   : > { %1070 = vst [vmem:[%s1673_s18 + $0x28] sm:$0xff] %v1014_v42   ;;  %1078 = vst [vmem:[%s1673_s18 + $0x68] sm:$0xff] %v1054_v43   ;;  %v509_v48 = vadd.f32 %v1135_v46, %v1661_v24  ;;  %v573_v49 = vadd.f32 %v1151_v47, %v1661_v24  ;;  %v500_v50 = vpop.f32.mrb[13].mxu0  ;;  %v564_v51 = vpop.f32.mrb[13].mxu1 }
 0x177   : > { %1069 = vst [vmem:[%s1673_s18 + $0x20] sm:$0xff] %v1009_v44   ;;  %1077 = vst [vmem:[%s1673_s18 + $0x60] sm:$0xff] %v1049_v45   ;;  %v501_v52 = vadd.f32 %v1661_v24, %v500_v50  ;;  %v565_v53 = vadd.f32 %v1661_v24, %v564_v51  ;;  %v1136_v54 = vpop.f32.mrb[14].mxu0  ;;  %v1152_v55 = vpop.f32.mrb[14].mxu1 }
 0x178   : > { %v512_v56 = vadd.f32 %v1136_v54, %v1661_v24  ;;  %v576_v57 = vadd.f32 %v1152_v55, %v1661_v24  ;;  %v503_v58 = vpop.f32.mrb[15].mxu0  ;;  %v567_v59 = vpop.f32.mrb[15].mxu1  ;;  %v593_v62 = vmax.f32 %v509_v48, 0.0  ;;  %v609_v63 = vmax.f32 %v573_v49, 0.0 }
 0x179   : > { %v504_v60 = vadd.f32 %v1661_v24, %v503_v58  ;;  %v568_v61 = vadd.f32 %v1661_v24, %v567_v59  ;;  %v591_v2 = vmax.f32 %v501_v52, 0.0  ;;  %v607_v3 = vmax.f32 %v565_v53, 0.0 }
 0x17a   : > { %v594_v0 = vmax.f32 %v512_v56, 0.0  ;;  %v610_v1 = vmax.f32 %v576_v57, 0.0 }
 0x17b   : > { %v592_v4 = vmax.f32 %v504_v60, 0.0  ;;  %v608_v5 = vmax.f32 %v568_v61, 0.0 }
 0x17c   : > { %v1024_v6 = vpack.c.bf16 %v594_v0, %v593_v62  ;;  %v1064_v7 = vpack.c.bf16 %v610_v1, %v609_v63 }
 0x17d   : > { %v1019_v24 = vpack.c.bf16 %v592_v4, %v591_v2  ;;  %v1059_v8 = vpack.c.bf16 %v608_v5, %v607_v3 }
 0x17e   : > { %1072 = vst [vmem:[%s1673_s18 + $0x38] sm:$0xff] %v1024_v6   ;;  %1080 = vst [vmem:[%s1673_s18 + $0x78] sm:$0xff] %v1064_v7  }
 0x17f   : > { %1071 = vst [vmem:[%s1673_s18 + $0x30] sm:$0xff] %v1019_v24   ;;  %1079 = vst [vmem:[%s1673_s18 + $0x70] sm:$0xff] %v1059_v8  }
 0x180   : > { %1363 = shalt.err (!%p1360_p1)
}
 0x181   : > { %s1364_s11 = scalar_lea.hbm %s1716_s16, 2048  ;;  %s1368_s27 = scalar_lea.hbm %s1769_s3, 4096 }
 0x182   : > { %p1365_p13 = scmp.ne.s32.totalorder %s1716_s16, %s1364_s11  ;;  %p1369_p4 = scmp.lt.u32.totalorder %s1716_s16, %s1769_s3 }
 0x183   : > { %p1370_p5 = scmp.lt.u32.totalorder %s1368_s27, %s1364_s11  ;;  %p1372_p11 = scmp.lt.u32.totalorder %s1364_s11, %s1716_s16 }
 0x184   : > { %p1366_p6 = pnand %p1365_p13, %p1783_p0 }
 0x185   : > { %p1371_p8 = por %p1370_p5, %p1369_p4 }
 0x186   : > { %p1367_p10 = pneg %p1366_p6 }
 0x187   : > { %p1373_p2 = por %p1372_p11, %p1371_p8 }
 0x189   : > { %p1374_p3 = pnand %p1373_p2, %p1367_p10 }
 0x18b   : > { %1377 = shalt.err (!%p1374_p3)
}
 0x18c   : > { %s1428_s22 = smov 64   ;;  %s1429_s18 = smov 4  }
 0x18d   : > { %1179 = dma.vmem_to_hbm [thread:$0]  (%p1783_p0), %s1718_s7, 2048, %s1716_s16, %s772_s28, %s1428_s22, %s1428_s22, %s1429_s18  }
 0x18e PF: > { %s800_s20 = sand.u32 1, %s1408_s12   ;;  %p1784_p7 = scmp.ne.s32.totalorder %s1774_s19, 0 }
 0x18f   : > { %p1785_p9 = scmp.ge.s32.totalorder %s1420_s15, 2  ;;  %s801_s8 = scalar_lea.sflag [#allocation4], %s800_s20 }
 0x191   : > { %p1193_p12 = pnand %p1785_p9, %p1784_p7 }
 0x193   : > { %1403 = dma.done.wait (!%p1193_p12), %s801_s8, 2048  }
 0x194   : > { %1405 = vsyncadd (!%p1193_p12), %s801_s8, 4294965248  ;;  %p17_p1 = scmp.ge.s32.totalorder %s1564_s5, 4   ;;  %s1786_s12 = smov %s1412_s13 }
 0x195   : > { %s1787_s13 = smov %s1416_s14  ;;  %s1788_s14 = smov %s1580_s10 }
 0x196   : > { %s1789_s15 = smov %s1564_s5  ;;  %19 = sbr.rel (!%p17_p1) target bundleno = 6 (0x6), region = 85 }
 0x19d   :  { %806 = vsyncpa [#allocation3], 1 }
 0x19e   :  { %808 = vsyncpa [#allocation3 + $0x1], 1 }
 0x19f   :  { %809 = vsyncpa [#allocation6], 1 }
 0x1a0   :  { %810 = vsyncpa [#allocation4], 1 }
 0x1a1   :  { %812 = vsyncpa [#allocation4 + $0x1], 1 }

</bundles_post_ra>
